<compile_context>
chip_gen: v7x
topology: tpu7x:2x2x1
jax: 0.10.0
libtpu: 0.0.40
codegen_flags: <defaults>
</compile_context>

<pallas_src>
import functools

import jax
import jax.numpy as jnp
import numpy as np
from jax.experimental import pallas as pl
from jax.experimental.pallas import tpu as pltpu

BN_EPS = 1e-5
HIDDEN = 128
PAD_OUT = 128          # lane-dense padded width of the output head
NEG_PAD = -1e30        # bias for padded action columns (argmax-safe)

# rows of the packed f32 parameter block (rows 0..7), w1 starts at row 8
_ROW_B1, _ROW_B2, _ROW_GAMMA, _ROW_BETA, _ROW_BOUT = 0, 1, 2, 3, 4
_W1_ROW0 = 8


def _bn_fused(h, gamma, beta):
    """Training-mode BatchNorm1d, centered variance, folded scale (f32)."""
    mean = jnp.mean(h, axis=0, keepdims=True)
    d = h - mean
    var = jnp.mean(d * d, axis=0, keepdims=True)          # biased variance
    scale = gamma * jax.lax.rsqrt(var + BN_EPS)            # rsqrt -> EUP slot
    return d * scale + beta


def _dqnet_kernel(state_size, x_ref, w_pack_ref, pars_ref, out_ref):
    # --- static, zero-cost views into the two packed parameter blocks ---
    b1 = pars_ref[_ROW_B1:_ROW_B1 + 1, :]
    b2 = pars_ref[_ROW_B2:_ROW_B2 + 1, :]
    gamma = pars_ref[_ROW_GAMMA:_ROW_GAMMA + 1, :]
    beta = pars_ref[_ROW_BETA:_ROW_BETA + 1, :]
    b_out = pars_ref[_ROW_BOUT:_ROW_BOUT + 1, :]
    w1 = pars_ref[_W1_ROW0:_W1_ROW0 + state_size, :]       # [state_size, 128] f32
    w2 = w_pack_ref[0]                                      # [128, 128] bf16
    w3 = w_pack_ref[1]                                      # [128, 128] bf16 (padded cols zero)

    # fc1 + relu + BN   (f32 operands; K=state_size is tiny on the MXU)
    h = jnp.dot(x_ref[...], w1, preferred_element_type=jnp.float32) + b1
    h = jnp.maximum(h, 0.0)
    h = _bn_fused(h, gamma, beta)

    # fc2 + relu + BN   (bf16 operands -> f32 accumulate)
    h = jnp.dot(h.astype(jnp.bfloat16), w2,
                preferred_element_type=jnp.float32) + b2
    h = jnp.maximum(h, 0.0)
    h = _bn_fused(h, gamma, beta)

    # output head: lane-dense [B, 128] store (padded cols == NEG_PAD)
    out_ref[...] = (jnp.dot(h.astype(jnp.bfloat16), w3,
                            preferred_element_type=jnp.float32) + b_out)


def dqnet_forward(x, params, padded=False):
    """x: [B, state_size] float32.  params: dict from init_params.

    Returns [B, n_actions] by default; `padded=True` returns the lane-dense
    [B, 128] block (padded action columns hold a large negative value, so
    argmax over it is safe) with no post-kernel slice on the latency path.
    """
    B = x.shape[0]
    kernel = functools.partial(_dqnet_kernel, params["state_size"])
    vmem = pl.BlockSpec(memory_space=pltpu.MemorySpace.VMEM)
    q_pad = pl.pallas_call(
        kernel,
        out_shape=jax.ShapeDtypeStruct((B, PAD_OUT), jnp.float32),
        in_specs=[vmem, vmem, vmem],
        out_specs=vmem,
    )(x, params["w_pack"], params["pars"])
    if padded:
        return q_pad
    return q_pad[:, :params["n_actions"]]


def init_params(key, state_size, n_actions, hidden=HIDDEN):
    """Deterministic synthetic parameters (PyTorch-like uniform fan-in init)."""
    ks = jax.random.split(key, 6)

    def linear(kw, kb, fan_in, fan_out):
        bound = 1.0 / np.sqrt(fan_in)
        w = jax.random.uniform(kw, (fan_out, fan_in), jnp.float32, -bound, bound)
        b = jax.random.uniform(kb, (fan_out,), jnp.float32, -bound, bound)
        return w, b

    w1, b1 = linear(ks[0], ks[1], state_size, hidden)
    w2, b2 = linear(ks[2], ks[3], hidden, hidden)
    wo, bo = linear(ks[4], ks[5], hidden, n_actions)

    gamma = jnp.ones((hidden,), jnp.float32)   # PyTorch BN init
    beta = jnp.zeros((hidden,), jnp.float32)

    # --- packed bf16 weight block: [2, 128, 128] (fc2, padded out head) ---
    w_out_t_pad = jnp.zeros((hidden, PAD_OUT), jnp.float32)
    w_out_t_pad = w_out_t_pad.at[:, :n_actions].set(wo.T)
    w_pack = jnp.stack([w2.T, w_out_t_pad]).astype(jnp.bfloat16)

    # --- packed f32 parameter block: rows 0..7 = row params, 8.. = w1_t ---
    b_out_pad = jnp.full((PAD_OUT,), NEG_PAD, jnp.float32).at[:n_actions].set(bo)
    state_rows = ((state_size + 7) // 8) * 8          # sublane-aligned pad
    pars = jnp.zeros((_W1_ROW0 + state_rows, PAD_OUT), jnp.float32)
    pars = pars.at[_ROW_B1].set(b1)
    pars = pars.at[_ROW_B2].set(b2)
    pars = pars.at[_ROW_GAMMA].set(gamma)
    pars = pars.at[_ROW_BETA].set(beta)
    pars = pars.at[_ROW_BOUT].set(b_out_pad)
    pars = pars.at[_W1_ROW0:_W1_ROW0 + state_size, :].set(w1.T)

    return {
        "state_size": state_size,
        "n_actions": n_actions,
        "w_pack": w_pack,        # [2, 128, 128] bf16
        "pars": pars,            # [8 + state_rows, 128] f32
        # full-precision copies for the reference
        "_ref": {
            "w1_t": w1.T, "b1": b1,
            "w2_t": w2.T, "b2": b2,
            "w_out_t": wo.T, "b_out": bo,
            "gamma": gamma, "beta": beta,
        },
    }


def dqnet_ref(x, params):
    """Pure-JAX f32 reference matching the PyTorch module (training-mode BN)."""
    p = params["_ref"]

    def bn(h):
        m = jnp.mean(h, axis=0, keepdims=True)
        v = jnp.mean((h - m) ** 2, axis=0, keepdims=True)
        return (h - m) / jnp.sqrt(v + BN_EPS) * p["gamma"] + p["beta"]

    h = jnp.maximum(x @ p["w1_t"] + p["b1"], 0.0)
    h = bn(h)
    h = jnp.maximum(h @ p["w2_t"] + p["b2"], 0.0)
    h = bn(h)
    return h @ p["w_out_t"] + p["b_out"]


if __name__ == "__main__":
    key = jax.random.PRNGKey(0)
    k_x, k_p = jax.random.split(key)

    B, STATE_SIZE, N_ACTIONS = 8, 16, 4
    x = jax.random.normal(k_x, (B, STATE_SIZE), jnp.float32)
    params = init_params(k_p, STATE_SIZE, N_ACTIONS)

    q = dqnet_forward(x, params)
    q = jax.block_until_ready(q)

    q_ref = dqnet_ref(x, params)
    # fc2 / out use bf16 matmul operands (f32 accumulate) -> loosened tolerance.
    np.testing.assert_allclose(np.asarray(q), np.asarray(q_ref),
                               rtol=2e-2, atol=2e-2)
    assert q.shape == (B, N_ACTIONS)

    # padded path: argmax over the lane-dense [B,128] block is phantom-safe.
    q_pad = jax.block_until_ready(dqnet_forward(x, params, padded=True))
    assert q_pad.shape == (B, PAD_OUT)
    assert np.all(np.asarray(jnp.argmax(q_pad, axis=-1)) < N_ACTIONS)

    print("KERNEL_OK")
</pallas_src>

<mosaic_0001>
module attributes {stable_mosaic.version = 11 : i64} {
  func.func @_dqnet_kernel(%arg0: memref<8x16xf32, #tpu.memory_space<vmem>>, %arg1: memref<2x128x128xbf16, #tpu.memory_space<vmem>>, %arg2: memref<24x128xf32, #tpu.memory_space<vmem>>, %arg3: memref<8x128xf32, #tpu.memory_space<vmem>>) attributes {dimension_semantics = [], scalar_prefetch = 0 : i64, scratch_operands = 0 : i64, tpu.core_type = #tpu.core_type<tc>} {
    %c0 = arith.constant 0 : index
    %c0_0 = arith.constant 0 : index
    %0 = vector.load %arg2[%c0, %c0_0] : memref<24x128xf32, #tpu.memory_space<vmem>>, vector<1x128xf32>
    %c1 = arith.constant 1 : index
    %c0_1 = arith.constant 0 : index
    %1 = vector.load %arg2[%c1, %c0_1] : memref<24x128xf32, #tpu.memory_space<vmem>>, vector<1x128xf32>
    %c2 = arith.constant 2 : index
    %c0_2 = arith.constant 0 : index
    %2 = vector.load %arg2[%c2, %c0_2] : memref<24x128xf32, #tpu.memory_space<vmem>>, vector<1x128xf32>
    %c3 = arith.constant 3 : index
    %c0_3 = arith.constant 0 : index
    %3 = vector.load %arg2[%c3, %c0_3] : memref<24x128xf32, #tpu.memory_space<vmem>>, vector<1x128xf32>
    %c4 = arith.constant 4 : index
    %c0_4 = arith.constant 0 : index
    %4 = vector.load %arg2[%c4, %c0_4] : memref<24x128xf32, #tpu.memory_space<vmem>>, vector<1x128xf32>
    %c8 = arith.constant 8 : index
    %c0_5 = arith.constant 0 : index
    %5 = vector.load %arg2[%c8, %c0_5] : memref<24x128xf32, #tpu.memory_space<vmem>>, vector<16x128xf32>
    %c0_6 = arith.constant 0 : index
    %c0_7 = arith.constant 0 : index
    %c0_8 = arith.constant 0 : index
    %6 = vector.load %arg1[%c0_6, %c0_7, %c0_8] : memref<2x128x128xbf16, #tpu.memory_space<vmem>>, vector<1x128x128xbf16>
    %7 = vector.shape_cast %6 : vector<1x128x128xbf16> to vector<128x128xbf16>
    %c1_9 = arith.constant 1 : index
    %c0_10 = arith.constant 0 : index
    %c0_11 = arith.constant 0 : index
    %8 = vector.load %arg1[%c1_9, %c0_10, %c0_11] : memref<2x128x128xbf16, #tpu.memory_space<vmem>>, vector<1x128x128xbf16>
    %9 = vector.shape_cast %8 : vector<1x128x128xbf16> to vector<128x128xbf16>
    %c0_12 = arith.constant 0 : index
    %c0_13 = arith.constant 0 : index
    %10 = vector.load %arg0[%c0_12, %c0_13] : memref<8x16xf32, #tpu.memory_space<vmem>>, vector<8x16xf32>
    %cst = arith.constant dense<0.000000e+00> : vector<8x128xf32>
    %11 = tpu.matmul %10, %5, %cst {dimension_numbers = #tpu.dot_dimension_numbers<[1], [0], [0], [1], [0, 0, 1, 1], [], []>} : vector<8x16xf32>, vector<16x128xf32>, vector<8x128xf32> -> vector<8x128xf32>
    %12 = vector.broadcast %0 : vector<1x128xf32> to vector<8x128xf32>
    %13 = arith.addf %11, %12 : vector<8x128xf32>
    %cst_14 = arith.constant 0.000000e+00 : f32
    %14 = vector.broadcast %cst_14 : f32 to vector<8x128xf32>
    %15 = arith.maximumf %13, %14 : vector<8x128xf32>
    %cst_15 = arith.constant dense<0.000000e+00> : vector<128xf32>
    %16 = vector.multi_reduction <add>, %15, %cst_15 [0] : vector<8x128xf32> to vector<128xf32>
    %17 = vector.shape_cast %16 : vector<128xf32> to vector<1x128xf32>
    %cst_16 = arith.constant 8.000000e+00 : f32
    %18 = vector.broadcast %cst_16 : f32 to vector<1x128xf32>
    %19 = arith.divf %17, %18 : vector<1x128xf32>
    %20 = vector.broadcast %19 : vector<1x128xf32> to vector<8x128xf32>
    %21 = arith.subf %15, %20 : vector<8x128xf32>
    %22 = arith.mulf %21, %21 : vector<8x128xf32>
    %cst_17 = arith.constant dense<0.000000e+00> : vector<128xf32>
    %23 = vector.multi_reduction <add>, %22, %cst_17 [0] : vector<8x128xf32> to vector<128xf32>
    %24 = vector.shape_cast %23 : vector<128xf32> to vector<1x128xf32>
    %cst_18 = arith.constant 8.000000e+00 : f32
    %25 = vector.broadcast %cst_18 : f32 to vector<1x128xf32>
    %26 = arith.divf %24, %25 : vector<1x128xf32>
    %cst_19 = arith.constant 9.99999974E-6 : f32
    %27 = vector.broadcast %cst_19 : f32 to vector<1x128xf32>
    %28 = arith.addf %26, %27 : vector<1x128xf32>
    %29 = math.rsqrt %28 : vector<1x128xf32>
    %30 = arith.mulf %2, %29 : vector<1x128xf32>
    %31 = vector.broadcast %30 : vector<1x128xf32> to vector<8x128xf32>
    %32 = arith.mulf %21, %31 : vector<8x128xf32>
    %33 = vector.broadcast %3 : vector<1x128xf32> to vector<8x128xf32>
    %34 = arith.addf %32, %33 : vector<8x128xf32>
    %35 = arith.truncf %34 : vector<8x128xf32> to vector<8x128xbf16>
    %cst_20 = arith.constant dense<0.000000e+00> : vector<8x128xf32>
    %36 = tpu.matmul %35, %7, %cst_20 {dimension_numbers = #tpu.dot_dimension_numbers<[1], [0], [0], [1], [0, 0, 1, 1], [], []>} : vector<8x128xbf16>, vector<128x128xbf16>, vector<8x128xf32> -> vector<8x128xf32>
    %37 = vector.broadcast %1 : vector<1x128xf32> to vector<8x128xf32>
    %38 = arith.addf %36, %37 : vector<8x128xf32>
    %cst_21 = arith.constant 0.000000e+00 : f32
    %39 = vector.broadcast %cst_21 : f32 to vector<8x128xf32>
    %40 = arith.maximumf %38, %39 : vector<8x128xf32>
    %cst_22 = arith.constant dense<0.000000e+00> : vector<128xf32>
    %41 = vector.multi_reduction <add>, %40, %cst_22 [0] : vector<8x128xf32> to vector<128xf32>
    %42 = vector.shape_cast %41 : vector<128xf32> to vector<1x128xf32>
    %cst_23 = arith.constant 8.000000e+00 : f32
    %43 = vector.broadcast %cst_23 : f32 to vector<1x128xf32>
    %44 = arith.divf %42, %43 : vector<1x128xf32>
    %45 = vector.broadcast %44 : vector<1x128xf32> to vector<8x128xf32>
    %46 = arith.subf %40, %45 : vector<8x128xf32>
    %47 = arith.mulf %46, %46 : vector<8x128xf32>
    %cst_24 = arith.constant dense<0.000000e+00> : vector<128xf32>
    %48 = vector.multi_reduction <add>, %47, %cst_24 [0] : vector<8x128xf32> to vector<128xf32>
    %49 = vector.shape_cast %48 : vector<128xf32> to vector<1x128xf32>
    %cst_25 = arith.constant 8.000000e+00 : f32
    %50 = vector.broadcast %cst_25 : f32 to vector<1x128xf32>
    %51 = arith.divf %49, %50 : vector<1x128xf32>
    %cst_26 = arith.constant 9.99999974E-6 : f32
    %52 = vector.broadcast %cst_26 : f32 to vector<1x128xf32>
    %53 = arith.addf %51, %52 : vector<1x128xf32>
    %54 = math.rsqrt %53 : vector<1x128xf32>
    %55 = arith.mulf %2, %54 : vector<1x128xf32>
    %56 = vector.broadcast %55 : vector<1x128xf32> to vector<8x128xf32>
    %57 = arith.mulf %46, %56 : vector<8x128xf32>
    %58 = vector.broadcast %3 : vector<1x128xf32> to vector<8x128xf32>
    %59 = arith.addf %57, %58 : vector<8x128xf32>
    %60 = arith.truncf %59 : vector<8x128xf32> to vector<8x128xbf16>
    %cst_27 = arith.constant dense<0.000000e+00> : vector<8x128xf32>
    %61 = tpu.matmul %60, %9, %cst_27 {dimension_numbers = #tpu.dot_dimension_numbers<[1], [0], [0], [1], [0, 0, 1, 1], [], []>} : vector<8x128xbf16>, vector<128x128xbf16>, vector<8x128xf32> -> vector<8x128xf32>
    %62 = vector.broadcast %4 : vector<1x128xf32> to vector<8x128xf32>
    %63 = arith.addf %61, %62 : vector<8x128xf32>
    %c0_28 = arith.constant 0 : index
    %c0_29 = arith.constant 0 : index
    %64 = vector.load %arg3[%c0_28, %c0_29] : memref<8x128xf32, #tpu.memory_space<vmem>>, vector<8x128xf32>
    tpu.vector_store %arg3[%c0_28, %c0_29], %63 {strides = array<i32>} : memref<8x128xf32, #tpu.memory_space<vmem>>, vector<8x128xf32>,
    return
  }
}

</mosaic_0001>

<bundles_post_ra>
// kernel: tpu_custom_call.1
= control target key start
LH: loop header
LB: loop body
LE: loop exit
PB: predicated region body
PF: predicated region fallthrough
CT: control target
= control target key end

     0   :  { %8 = vsyncpa [#allocation3], 0  ;;  %s749_s0 = inlined_call_operand.hbm [shape: f32[8,16], index: 0, kind: input, shape index: {}]   ;;  %s750_s1 = inlined_call_operand.hbm [shape: bf16[2,128,128], index: 1, kind: input, shape index: {}]   ;;  %s751_s2 = inlined_call_operand.hbm [shape: f32[24,128], index: 2, kind: input, shape index: {}]   ;;  %s752_s3 = inlined_call_operand.hbm [shape: f32[8,128], index: 3, kind: output, shape index: {}]  }
   0x1   :  { %9 = vsyncpa [#allocation6], 0 }
   0x2   :  { %10 = vsyncpa [#allocation4], 0  ;;  %s651_s12 = smov [#allocation5]   ;;  %s557_s16 = scalar_lea.hbm %s750_s1, 2048 }
   0x3   :  { %s26_s13 = sshll.u32 %s651_s12, 4  ;;  %p558_p0 = scmp.ne.s32.totalorder %s750_s1, %s557_s16  ;;  %s27_s13 = int_to_ptr.vmem [resolvable:$true] %s26_s13 }
   0x4   :  { %p561_p1 = scmp.lt.u32.totalorder %s557_s16, %s750_s1 }
   0x6   :  { %p563_p2 = pnand %p561_p1, %p558_p0 }
   0x8   :  { %566 = shalt.err (!%p563_p2)
}
   0x9   :  { %s567_s21 = scalar_lea.vmem %s27_s13, 2048  ;;  %p572_p4 = scmp.lt.s32.totalorder %s27_s13, %s27_s13 }
   0xa   :  { %p568_p3 = scmp.ne.s32.totalorder %s27_s13, %s567_s21  ;;  %p573_p5 = scmp.lt.s32.totalorder %s567_s21, %s567_s21 }
   0xc   :  { %p574_p6 = por %p573_p5, %p572_p4 }
   0xe   :  { %p575_p7 = pnand %p574_p6, %p568_p3 }
  0x10   :  { %578 = shalt.err (!%p575_p7)
}
  0x11   :  { %s652_s22 = smov 64   ;;  %s653_s23 = smov 4  }
  0x12   :  { %32 = dma.hbm_to_vmem [thread:$0]  %s750_s1, 2048, %s27_s13, [#allocation6], %s652_s22, %s652_s22, %s653_s23  }
  0x13   :  { %s654_s26 = smov [#allocation2]   ;;  %s655_s28 = smov [#allocation7]  }
  0x14   :  { %s17_s27 = sshll.u32 %s654_s26, 4  ;;  %s38_s29 = sshll.u32 %s655_s28, 4  ;;  %s18_s27 = int_to_ptr.vmem [resolvable:$true] %s17_s27  ;;  %s39_s29 = int_to_ptr.vmem [resolvable:$true] %s38_s29 }
  0x15   :  { %s579_s5 = scalar_lea.hbm %s749_s0, 128 }
  0x16   :  { %p580_p8 = scmp.ne.s32.totalorder %s749_s0, %s579_s5  ;;  %p583_p9 = scmp.lt.u32.totalorder %s579_s5, %s749_s0 }
  0x18   :  { %p585_p10 = pnand %p583_p9, %p580_p8 }
  0x1a   :  { %588 = shalt.err (!%p585_p10)
}
  0x1b   :  { %s589_s1 = scalar_lea.vmem %s18_s27, 128  ;;  %p594_p12 = scmp.lt.s32.totalorder %s18_s27, %s18_s27 }
  0x1c   :  { %p590_p11 = scmp.ne.s32.totalorder %s18_s27, %s589_s1  ;;  %p595_p13 = scmp.lt.s32.totalorder %s589_s1, %s589_s1 }
  0x1e   :  { %p596_p0 = por %p595_p13, %p594_p12 }
  0x20   :  { %p597_p1 = pnand %p596_p0, %p590_p11 }
  0x22   :  { %600 = shalt.err (!%p597_p1)
}
  0x23   :  { %20 = dma.hbm_to_vmem [thread:$0]  %s749_s0, 128, %s18_s27, [#allocation3]  }
  0x24   :  { %s601_s14 = scalar_lea.hbm %s751_s2, 384 }
  0x25   :  { %p602_p2 = scmp.ne.s32.totalorder %s751_s2, %s601_s14  ;;  %p605_p3 = scmp.lt.u32.totalorder %s601_s14, %s751_s2 }
  0x27   :  { %p607_p4 = pnand %p605_p3, %p602_p2 }
  0x29   :  { %610 = shalt.err (!%p607_p4)
}
  0x2a   :  { %s611_s19 = scalar_lea.vmem %s39_s29, 384  ;;  %p616_p6 = scmp.lt.s32.totalorder %s39_s29, %s39_s29 }
  0x2b   :  { %p612_p5 = scmp.ne.s32.totalorder %s39_s29, %s611_s19  ;;  %p617_p7 = scmp.lt.s32.totalorder %s611_s19, %s611_s19 }
  0x2d   :  { %p618_p8 = por %p617_p7, %p616_p6 }
  0x2f   :  { %p619_p9 = pnand %p618_p8, %p612_p5 }
  0x31   :  { %622 = shalt.err (!%p619_p9)
}
  0x32   :  { %s656_s0 = smov 128   ;;  %s657_s20 = smov 8  }
  0x33   :  { %44 = dma.hbm_to_vmem [thread:$0]  %s751_s2, 384, %s39_s29, [#allocation6], %s656_s0, %s656_s0, %s657_s20  }
  0x34   :  { %645 = dma.done.wait [#allocation3], 128  }
  0x35   :  { %646 = vsyncadd [#allocation3], 4294967168 }
  0x36   :  { %647 = dma.done.wait [#allocation6], 2432  }
  0x37   :  { %648 = vsyncadd [#allocation6], 4294964864  ;;  %v658_v0 = vmov 0.0|0.0   ;;  %vm659_vm0 = vmmov 0   ;;  %v660_v1 = vmov 0.0   ;;  %v60_v2 = vld [vmem:[#allocation7 + $0x8] sm:$0xff]  ;;  %v195_v36 = vlaneseq }
  0x38   :  { %523 = vmatprep.subr.bf16.mxu0 %v658_v0  ;;  %480 = vmatprep.mubr.msk.f32.mxu0 %vm659_vm0, %v660_v1  ;;  %v61_v3 = vld [vmem:[#allocation7 + $0x10] sm:$0xff]  ;;  %v95_v5 = vld [vmem:[#allocation2] sm:$0xff]  ;;  %vm100_vm1 = vcmask 130048   ;;  %v537_v6 = vld [vmem:[#allocation5] sm:$0xff]   ;;  %s661_s2 = smov [#allocation8]  }
  0x39   :  { %483 = vmatprep.subr.bf16.mxu1 %v660_v1  ;;  %499 = vmatprep.mubr.msk.bf16.mxu1 %vm659_vm0, %v660_v1  ;;  %v524_v4 = vpack.c.bf16 %v61_v3, %v60_v2  ;;  %v538_v7 = vld [vmem:[#allocation5 + $0x8] sm:$0xff]   ;;  %v539_v8 = vld [vmem:[#allocation5 + $0x10] sm:$0xff]   ;;  %v540_v9 = vld [vmem:[#allocation5 + $0x18] sm:$0xff]   ;;  %v196_v37 = vshrl.u32 %v195_v36, 7  ;;  %s424_s23 = sshll.u32 %s661_s2, 4  ;;  %s425_s23 = int_to_ptr.vmem [resolvable:$true] %s424_s23 }
  0x3a   :  { %484 = vmatpush3.bf16.msra.mxu1 %v537_v6  ;;  %v541_v10 = vld [vmem:[#allocation5 + $0x20] sm:$0xff]   ;;  %v542_v11 = vld [vmem:[#allocation5 + $0x28] sm:$0xff]   ;;  %v543_v12 = vld [vmem:[#allocation5 + $0x30] sm:$0xff]   ;;  %s623_s24 = scalar_lea.vmem %s425_s23, 128  ;;  %p628_p11 = scmp.lt.s32.totalorder %s425_s23, %s425_s23 }
  0x3b   :  { %525 = vmatpush3.bf16.msra.mxu0 %v524_v4  ;;  %485 = vmatprep.subr.bf16.mxu1 %v660_v1  ;;  %v544_v13 = vld [vmem:[#allocation5 + $0x38] sm:$0xff]   ;;  %v434_v14 = vld [vmem:[#allocation7] ss:$0 sm:$0xff]  ;;  %v57_v38 = vld [vmem:[#allocation7 + $0x2] sm:$0x1]  ;;  %v197_v39 = vsub.s32 0, %v196_v37  ;;  %p624_p10 = scmp.ne.s32.totalorder %s425_s23, %s623_s24  ;;  %p629_p12 = scmp.lt.s32.totalorder %s623_s24, %s623_s24 }
  0x3c   :  { %503 = vmatprep.subr.bf16.mxu0 %v660_v1  ;;  %v436_v43 = vld [vmem:[#allocation7 + $0x3] ss:$0 sm:$0xff]  ;;  %v546_v48 = vld [vmem:[#allocation5 + $0x48] sm:$0xff]   ;;  %v547_v49 = vld [vmem:[#allocation5 + $0x50] sm:$0xff]  }
  0x3d   :  { %v545_v47 = vld [vmem:[#allocation5 + $0x40] sm:$0xff]   ;;  %v548_v50 = vld [vmem:[#allocation5 + $0x58] sm:$0xff]   ;;  %v550_v52 = vld [vmem:[#allocation5 + $0x68] sm:$0xff]   ;;  %p630_p13 = por %p629_p12, %p628_p11 }
  0x3e   :  { %481 = vmatmul.mubr.msk.f32.vlgmr.msra.gmra.mrb[0].mxu0 %vm100_vm1, %v95_v5  ;;  %486 = vmatpush3.bf16.msra.mxu1 %v538_v7  ;;  %v549_v51 = vld [vmem:[#allocation5 + $0x60] sm:$0xff]   ;;  %v551_v53 = vld [vmem:[#allocation5 + $0x70] sm:$0xff]   ;;  %v552_v54 = vld [vmem:[#allocation5 + $0x78] sm:$0xff]  }
  0x3f   :  { %519 = vmatprep.mubr.msk.bf16.mxu0 %vm659_vm0, %v660_v1  ;;  %487 = vmatprep.subr.bf16.mxu1 %v660_v1  ;;  %v437_v55 = vld [vmem:[#allocation7 + $0x1] ss:$0 sm:$0xff]  ;;  %p631_p0 = pnand %p630_p13, %p624_p10 }
  0x40   :  { %504 = vmatpush3.bf16.msra.mxu0 %v545_v47 }
  0x41   :  { %505 = vmatprep.subr.bf16.mxu0 %v660_v1 }
  0x42   :  { %488 = vmatpush3.bf16.msra.mxu1 %v539_v8 }
  0x43   :  { %489 = vmatprep.subr.bf16.mxu1 %v660_v1 }
  0x44   :  { %506 = vmatpush3.bf16.msra.mxu0 %v546_v48 }
  0x45   :  { %507 = vmatprep.subr.bf16.mxu0 %v660_v1 }
  0x46   :  { %490 = vmatpush3.bf16.msra.mxu1 %v540_v9 }
  0x47   :  { %491 = vmatprep.subr.bf16.mxu1 %v660_v1 }
  0x48   :  { %508 = vmatpush3.bf16.msra.mxu0 %v547_v49 }
  0x49   :  { %509 = vmatprep.subr.bf16.mxu0 %v660_v1 }
  0x4a   :  { %492 = vmatpush3.bf16.msra.mxu1 %v541_v10 }
  0x4b   :  { %493 = vmatprep.subr.bf16.mxu1 %v660_v1 }
  0x4c   :  { %510 = vmatpush3.bf16.msra.mxu0 %v548_v50 }
  0x4d   :  { %511 = vmatprep.subr.bf16.mxu0 %v660_v1 }
  0x4e   :  { %494 = vmatpush3.bf16.msra.mxu1 %v542_v11 }
  0x4f   :  { %495 = vmatprep.subr.bf16.mxu1 %v660_v1 }
  0x50   :  { %512 = vmatpush3.bf16.msra.mxu0 %v549_v51 }
  0x51   :  { %513 = vmatprep.subr.bf16.mxu0 %v660_v1 }
  0x52   :  { %496 = vmatpush3.bf16.msra.mxu1 %v543_v12 }
  0x53   :  { %497 = vmatprep.subr.bf16.mxu1 %v660_v1 }
  0x54   :  { %514 = vmatpush3.bf16.msra.mxu0 %v550_v52 }
  0x55   :  { %515 = vmatprep.subr.bf16.mxu0 %v660_v1 }
  0x56   :  { %498 = vmatpush3.bf16.msra.mxu1 %v544_v13 }
  0x58   :  { %516 = vmatpush3.bf16.msra.mxu0 %v551_v53 }
  0x59   :  { %517 = vmatprep.subr.bf16.mxu0 %v660_v1 }
  0x5c   :  { %518 = vmatpush3.bf16.msra.mxu0 %v552_v54 }
 0x111   :  { %v170_v15 = vpop.f32.mrb[0].mxu0 }
 0x112   :  { %v171_v16 = vadd.f32 %v434_v14, %v170_v15  ;;  %v482_v17 = vpop.f32.mrb[1].mxu0 }
 0x114   :  { %v174_v18 = vmax.f32 %v171_v16, 0.0 }
 0x116   :  { %v175_v19 = vrot.slane %v174_v18, 4 }
 0x118   :  { %v176_v20 = vadd.f32 %v175_v19, %v174_v18 }
 0x11a   :  { %v177_v21 = vrot.slane %v176_v20, 2 }
 0x11c   :  { %v178_v22 = vadd.f32 %v177_v21, %v176_v20  ;;  %v446_v21 = vld [vmem:[#allocation7 + $0x4] ss:$0 sm:$0xff] }
 0x11e   :  { %v179_v23 = vrot.slane %v178_v22, 1 }
 0x120   :  { %v180_v24 = vadd.f32 %v179_v23, %v178_v22 }
 0x122   :  { %v182_v25 = vmul.f32 0.125, %v180_v24 }
 0x124   :  { %v183_v26 = vsub.f32 %v174_v18, %v182_v25 }
 0x126   :  { %v184_v27 = vmul.f32 %v183_v26, %v183_v26 }
 0x128   :  { %v185_v28 = vrot.slane %v184_v27, 4 }
 0x12a   :  { %v186_v29 = vadd.f32 %v185_v28, %v184_v27 }
 0x12c   :  { %v187_v30 = vrot.slane %v186_v29, 2 }
 0x12e   :  { %v188_v31 = vadd.f32 %v187_v30, %v186_v29 }
 0x130   :  { %v189_v32 = vrot.slane %v188_v31, 1 }
 0x132   :  { %v190_v33 = vadd.f32 %v189_v32, %v188_v31 }
 0x134   :  { %v191_v34 = vmul.f32 0.125, %v190_v33 }
 0x136   :  { %v192_v35 = vadd.f32 1e-05, %v191_v34 }
 0x138   :  { %553 = vrsqrt.f32 %v192_v35 }
 0x142   :  { %v554_v40 = vpop.eup %553 }
 0x143   :  { %v194_v41 = vmul.f32 %v554_v40, %v57_v38 }
 0x145   :  { %v198_v42 = vrot.slane %v194_v41, %v197_v39 }
 0x147   :  { %v199_v44 = vmul.f32 %v198_v42, %v183_v26 }
 0x149   :  { %v204_v45 = vadd.f32 %v436_v43, %v199_v44 }
 0x14b   :  { %v205_v46 = vpack.c.bf16 %v204_v45, %v204_v45 }
 0x14d   :  { %500 = vmatmul.mubr.bf16.vlgmr.msra.gmra.mrb[0].mxu1 %v205_v46 }
 0x220   :  { %v292_v56 = vpop.f32.mrb[0].mxu1 }
 0x221   :  { %v293_v57 = vadd.f32 %v437_v55, %v292_v56  ;;  %v501_v58 = vpop.f32.mrb[1].mxu1 }
 0x222   :  { %v295_v59 = vpop.f32.mrb[2].mxu1 }
 0x223   :  { %v298_v60 = vmax.f32 %v293_v57, 0.0  ;;  %v502_v61 = vpop.f32.mrb[3].mxu1 }
 0x225   :  { %v299_v62 = vrot.slane %v298_v60, 4 }
 0x227   :  { %v300_v63 = vadd.f32 %v299_v62, %v298_v60 }
 0x229   :  { %v301_v0 = vrot.slane %v300_v63, 2 }
 0x22b   :  { %v302_v2 = vadd.f32 %v301_v0, %v300_v63 }
 0x22d   :  { %v303_v3 = vrot.slane %v302_v2, 1 }
 0x22f   :  { %v304_v4 = vadd.f32 %v303_v3, %v302_v2 }
 0x231   :  { %v305_v5 = vmul.f32 0.125, %v304_v4 }
 0x233   :  { %v306_v6 = vsub.f32 %v298_v60, %v305_v5 }
 0x235   :  { %v307_v7 = vmul.f32 %v306_v6, %v306_v6 }
 0x237   :  { %v308_v8 = vrot.slane %v307_v7, 4 }
 0x239   :  { %v309_v1 = vadd.f32 %v308_v8, %v307_v7 }
 0x23b   :  { %v310_v9 = vrot.slane %v309_v1, 2 }
 0x23d   :  { %v311_v10 = vadd.f32 %v310_v9, %v309_v1 }
 0x23f   :  { %v312_v11 = vrot.slane %v311_v10, 1 }
 0x241   :  { %v313_v12 = vadd.f32 %v312_v11, %v311_v10 }
 0x243   :  { %v314_v13 = vmul.f32 0.125, %v313_v12 }
 0x245   :  { %v315_v14 = vadd.f32 1e-05, %v314_v13 }
 0x247   :  { %555 = vrsqrt.f32 %v315_v14 }
 0x251   :  { %v556_v15 = vpop.eup %555 }
 0x252   :  { %v317_v16 = vmul.f32 %v556_v15, %v57_v38 }
 0x254   :  { %v321_v17 = vrot.slane %v317_v16, %v197_v39 }
 0x256   :  { %v322_v18 = vmul.f32 %v321_v17, %v306_v6 }
 0x258   :  { %v323_v19 = vadd.f32 %v436_v43, %v322_v18 }
 0x25a   :  { %v324_v20 = vpack.c.bf16 %v323_v19, %v323_v19 }
 0x25c   :  { %520 = vmatmul.mubr.bf16.vlgmr.msra.gmra.mrb[4].mxu0 %v324_v20 }
 0x32f   :  { %v411_v22 = vpop.f32.mrb[4].mxu0 }
 0x330   :  { %v412_v23 = vadd.f32 %v446_v21, %v411_v22  ;;  %v521_v24 = vpop.f32.mrb[5].mxu0 }
 0x331   :  { %v414_v25 = vpop.f32.mrb[6].mxu0 }
 0x332   :  { %417 = vst [vmem:[#allocation8] sm:$0xff] %v412_v23  ;;  %v522_v26 = vpop.f32.mrb[7].mxu0 }
 0x333   :  { %634 = shalt.err (!%p631_p0)
}
 0x334   :  { %s635_s27 = scalar_lea.hbm %s752_s3, 128 }
 0x335   :  { %p636_p1 = scmp.ne.s32.totalorder %s752_s3, %s635_s27  ;;  %p639_p2 = scmp.lt.u32.totalorder %s635_s27, %s752_s3 }
 0x337   :  { %p641_p3 = pnand %p639_p2, %p636_p1 }
 0x339   :  { %644 = shalt.err (!%p641_p3)
}
 0x33a   :  { %427 = dma.vmem_to_hbm [thread:$0]  %s425_s23, 128, %s752_s3, [#allocation4]  }
 0x33b   :  { %649 = dma.done.wait [#allocation4], 128  }
 0x33c   :  { %650 = vsyncadd [#allocation4], 4294967168 }
 0x33d   :  { %431 = vsyncpa [#allocation3], 1 }
 0x33e   :  { %432 = vsyncpa [#allocation6], 1 }
 0x33f   :  { %433 = vsyncpa [#allocation4], 1 }

</bundles_post_ra>
